<compile_context>
chip_gen: v7x
topology: tpu7x:2x2x1
jax: 0.10.0
libtpu: 0.0.40
codegen_flags: <defaults>
</compile_context>

<pallas_src>
import functools

import jax
import jax.numpy as jnp
from jax.experimental import pallas as pl
from jax.experimental.pallas import tpu as pltpu


def _round_up(x, m):
    return ((x + m - 1) // m) * m


def dnn_kernel(x_ref,
               w1_ref, b1_ref,
               w2_ref, b2_ref,
               w3_ref, b3_ref,
               w4_ref, b4_ref,
               w5_ref, b5_ref,
               w6_ref, b6_ref,
               o_ref):
    """Fused 6-layer MLP forward for one batch tile (all weights resident in VMEM)."""
    compute_dtype = w1_ref.dtype
    h = x_ref[...]

    def linear_relu(h, w_ref, b_ref):
        # MXU matmul in compute_dtype with f32 accumulation; bias add + ReLU in f32 (VPU).
        y = jnp.dot(h, w_ref[...], preferred_element_type=jnp.float32) + b_ref[...]
        return jnp.maximum(y, 0.0).astype(compute_dtype)

    h = linear_relu(h, w1_ref, b1_ref)
    h = linear_relu(h, w2_ref, b2_ref)
    h = linear_relu(h, w3_ref, b3_ref)
    h = linear_relu(h, w4_ref, b4_ref)
    h = linear_relu(h, w5_ref, b5_ref)
    # Output layer: no ReLU, keep f32 logits. Output width is lane-padded to 128,
    # so this is an unmasked (lane-dense) store.
    o_ref[...] = (jnp.dot(h, w6_ref[...], preferred_element_type=jnp.float32)
                  + b6_ref[...]).astype(o_ref.dtype)


def dnn_forward(x, params, *, batch_tile=256, compute_dtype=jnp.bfloat16):
    """Forward pass of the DNN.

    x:      (B, num_features) float32
    params: list of (W, b) with W (in_features, out_features) f32, b (1, out_features) f32
    Returns (B, 10) float32 logits.
    """
    B, F = x.shape
    n_layers = len(params)
    out_dim = params[-1][0].shape[1]

    # ---- padded (lane-aligned) dimensions ---------------------------------------------------
    F_pad = _round_up(F, 128)
    out_pads = [_round_up(w.shape[1], 128) for (w, _) in params]
    in_pads = [F_pad] + out_pads[:-1]
    O_pad = out_pads[-1]

    # ---- batch tiling (pad B up to a multiple of the tile; padded rows sliced off later) -----
    tile = _round_up(min(batch_tile, _round_up(B, 8)), 8)
    B_pad = _round_up(B, tile)
    grid = (B_pad // tile,)

    # ---- pad & cast inputs / parameters ------------------------------------------------------
    x_p = jnp.pad(x.astype(compute_dtype), ((0, B_pad - B), (0, F_pad - F)))

    flat_args = [x_p]
    in_specs = [pl.BlockSpec((tile, F_pad), lambda i: (i, 0))]
    for layer, (w, b) in enumerate(params):
        wi, wo = w.shape
        w_p = jnp.pad(w, ((0, in_pads[layer] - wi), (0, out_pads[layer] - wo))
                      ).astype(compute_dtype)
        b_p = jnp.pad(b, ((0, 0), (0, out_pads[layer] - wo))).astype(jnp.float32)
        flat_args.extend([w_p, b_p])
        # Grid-invariant blocks: constant (0, 0) index_map -> fetched once, kept resident.
        in_specs.append(pl.BlockSpec(w_p.shape, lambda i: (0, 0)))
        in_specs.append(pl.BlockSpec(b_p.shape, lambda i: (0, 0)))

    # ---- cost estimate (helps XLA scheduling around the custom call) -------------------------
    itemsize = jnp.dtype(compute_dtype).itemsize
    flops = int(2 * B_pad * sum(in_pads[j] * out_pads[j] for j in range(n_layers)))
    weight_bytes = sum(int(a.size) * a.dtype.itemsize for a in flat_args[1:])
    bytes_accessed = int(B_pad * F_pad * itemsize + weight_bytes + B_pad * O_pad * 4)
    cost = pl.CostEstimate(flops=flops, transcendentals=0, bytes_accessed=bytes_accessed)

    # ---- VMEM budget (double-buffered x / out blocks + resident weights + f32 intermediates) -
    est = (2 * tile * F_pad * itemsize        # x double buffer
           + 2 * tile * O_pad * 4             # out double buffer (f32)
           + 2 * weight_bytes                 # weights/biases (worst case, double buffered)
           + 4 * tile * 128 * 4)              # live f32 intermediates
    vmem_limit = int(min(max(2 * est, 32 * 1024 * 1024), 64 * 1024 * 1024))

    out_padded = pl.pallas_call(
        dnn_kernel,
        out_shape=jax.ShapeDtypeStruct((B_pad, O_pad), jnp.float32),
        grid_spec=pltpu.PrefetchScalarGridSpec(
            num_scalar_prefetch=0,
            grid=grid,
            in_specs=in_specs,
            out_specs=pl.BlockSpec((tile, O_pad), lambda i: (i, 0)),
        ),
        compiler_params=pltpu.CompilerParams(
            dimension_semantics=("parallel",),
            vmem_limit_bytes=vmem_limit,
        ),
        cost_estimate=cost,
    )(*flat_args)

    # Drop the batch padding and the lane padding of the 10-wide output.
    return out_padded[:B, :out_dim]


def init_params(key, num_features):
    """Deterministic init matching nn.Linear default: U(-1/sqrt(fan_in), 1/sqrt(fan_in))."""
    dims = [(num_features, 100), (100, 100), (100, 100),
            (100, 100), (100, 100), (100, 10)]
    params = []
    for (fan_in, fan_out) in dims:
        key, kw, kb = jax.random.split(key, 3)
        bound = 1.0 / jnp.sqrt(jnp.float32(fan_in))
        w = jax.random.uniform(kw, (fan_in, fan_out), jnp.float32, -bound, bound)
        b = jax.random.uniform(kb, (1, fan_out), jnp.float32, -bound, bound)
        params.append((w, b))
    return params


def dnn_reference(x, params, compute_dtype=jnp.bfloat16):
    """Pure-JAX reference with identical numerics (bf16 operands, f32 accumulation)."""
    h = x.astype(compute_dtype)
    n = len(params)
    y = None
    for idx, (w, b) in enumerate(params):
        y = jnp.dot(h, w.astype(compute_dtype),
                    preferred_element_type=jnp.float32) + b.astype(jnp.float32)
        if idx < n - 1:
            h = jnp.maximum(y, 0.0).astype(compute_dtype)
    return y


if __name__ == "__main__":
    key = jax.random.PRNGKey(0)
    num_features = 784   # MNIST flattened 28*28 (what the original module is built for)
    batch = 48           # small; deliberately not a multiple of the tile -> exercises pad path

    kx, kp = jax.random.split(key)
    x = jax.random.normal(kx, (batch, num_features), jnp.float32)
    params = init_params(kp, num_features)

    # batch_tile=32 -> padded batch 64, grid of 2 parallel tiles (keeps both v7x TCs busy).
    out = dnn_forward(x, params, batch_tile=32)
    out = jax.block_until_ready(out)

    ref = dnn_reference(x, params)
    assert out.shape == (batch, 10), out.shape
    max_err = float(jnp.max(jnp.abs(out - ref)))
    assert jnp.allclose(out, ref, atol=2e-2, rtol=2e-2), f"max abs err {max_err}"
    print("KERNEL_OK")
</pallas_src>

<mosaic_0001>
module attributes {stable_mosaic.version = 11 : i64} {
  func.func @dnn_kernel(%arg0: i32, %arg1: memref<32x896xbf16, #tpu.memory_space<vmem>>, %arg2: memref<896x128xbf16, #tpu.memory_space<vmem>>, %arg3: memref<1x128xf32, #tpu.memory_space<vmem>>, %arg4: memref<128x128xbf16, #tpu.memory_space<vmem>>, %arg5: memref<1x128xf32, #tpu.memory_space<vmem>>, %arg6: memref<128x128xbf16, #tpu.memory_space<vmem>>, %arg7: memref<1x128xf32, #tpu.memory_space<vmem>>, %arg8: memref<128x128xbf16, #tpu.memory_space<vmem>>, %arg9: memref<1x128xf32, #tpu.memory_space<vmem>>, %arg10: memref<128x128xbf16, #tpu.memory_space<vmem>>, %arg11: memref<1x128xf32, #tpu.memory_space<vmem>>, %arg12: memref<128x128xbf16, #tpu.memory_space<vmem>>, %arg13: memref<1x128xf32, #tpu.memory_space<vmem>>, %arg14: memref<32x128xf32, #tpu.memory_space<vmem>>) attributes {dimension_semantics = [#tpu.dimension_semantics<parallel>], iteration_bounds = array<i64: 2>, scalar_prefetch = 0 : i64, scratch_operands = 0 : i64, tpu.core_type = #tpu.core_type<tc>, window_params = [{transform_indices = @transform_0, window_bounds = array<i64: 32, 896>}, {pipeline_mode = #tpu.pipeline_mode<synchronous>, transform_indices = @transform_1, window_bounds = array<i64: 896, 128>}, {pipeline_mode = #tpu.pipeline_mode<synchronous>, transform_indices = @transform_2, window_bounds = array<i64: 1, 128>}, {pipeline_mode = #tpu.pipeline_mode<synchronous>, transform_indices = @transform_3, window_bounds = array<i64: 128, 128>}, {pipeline_mode = #tpu.pipeline_mode<synchronous>, transform_indices = @transform_4, window_bounds = array<i64: 1, 128>}, {pipeline_mode = #tpu.pipeline_mode<synchronous>, transform_indices = @transform_5, window_bounds = array<i64: 128, 128>}, {pipeline_mode = #tpu.pipeline_mode<synchronous>, transform_indices = @transform_6, window_bounds = array<i64: 1, 128>}, {pipeline_mode = #tpu.pipeline_mode<synchronous>, transform_indices = @transform_7, window_bounds = array<i64: 128, 128>}, {pipeline_mode = #tpu.pipeline_mode<synchronous>, transform_indices = @transform_8, window_bounds = array<i64: 1, 128>}, {pipeline_mode = #tpu.pipeline_mode<synchronous>, transform_indices = @transform_9, window_bounds = array<i64: 128, 128>}, {pipeline_mode = #tpu.pipeline_mode<synchronous>, transform_indices = @transform_10, window_bounds = array<i64: 1, 128>}, {pipeline_mode = #tpu.pipeline_mode<synchronous>, transform_indices = @transform_11, window_bounds = array<i64: 128, 128>}, {pipeline_mode = #tpu.pipeline_mode<synchronous>, transform_indices = @transform_12, window_bounds = array<i64: 1, 128>}, {transform_indices = @transform_13, window_bounds = array<i64: 32, 128>}]} {
    %c0 = arith.constant 0 : index
    %c0_0 = arith.constant 0 : index
    %0 = vector.load %arg1[%c0, %c0_0] : memref<32x896xbf16, #tpu.memory_space<vmem>>, vector<32x896xbf16>
    %c0_1 = arith.constant 0 : index
    %c0_2 = arith.constant 0 : index
    %1 = vector.load %arg2[%c0_1, %c0_2] : memref<896x128xbf16, #tpu.memory_space<vmem>>, vector<896x128xbf16>
    %cst = arith.constant dense<0.000000e+00> : vector<32x128xf32>
    %2 = tpu.matmul %0, %1, %cst {dimension_numbers = #tpu.dot_dimension_numbers<[1], [0], [0], [1], [0, 0, 1, 1], [], []>} : vector<32x896xbf16>, vector<896x128xbf16>, vector<32x128xf32> -> vector<32x128xf32>
    %c0_3 = arith.constant 0 : index
    %c0_4 = arith.constant 0 : index
    %3 = vector.load %arg3[%c0_3, %c0_4] : memref<1x128xf32, #tpu.memory_space<vmem>>, vector<1x128xf32>
    %4 = vector.broadcast %3 : vector<1x128xf32> to vector<32x128xf32>
    %5 = arith.addf %2, %4 : vector<32x128xf32>
    %cst_5 = arith.constant 0.000000e+00 : f32
    %6 = vector.broadcast %cst_5 : f32 to vector<32x128xf32>
    %7 = arith.maximumf %5, %6 : vector<32x128xf32>
    %8 = arith.truncf %7 : vector<32x128xf32> to vector<32x128xbf16>
    %c0_6 = arith.constant 0 : index
    %c0_7 = arith.constant 0 : index
    %9 = vector.load %arg4[%c0_6, %c0_7] : memref<128x128xbf16, #tpu.memory_space<vmem>>, vector<128x128xbf16>
    %cst_8 = arith.constant dense<0.000000e+00> : vector<32x128xf32>
    %10 = tpu.matmul %8, %9, %cst_8 {dimension_numbers = #tpu.dot_dimension_numbers<[1], [0], [0], [1], [0, 0, 1, 1], [], []>} : vector<32x128xbf16>, vector<128x128xbf16>, vector<32x128xf32> -> vector<32x128xf32>
    %c0_9 = arith.constant 0 : index
    %c0_10 = arith.constant 0 : index
    %11 = vector.load %arg5[%c0_9, %c0_10] : memref<1x128xf32, #tpu.memory_space<vmem>>, vector<1x128xf32>
    %12 = vector.broadcast %11 : vector<1x128xf32> to vector<32x128xf32>
    %13 = arith.addf %10, %12 : vector<32x128xf32>
    %cst_11 = arith.constant 0.000000e+00 : f32
    %14 = vector.broadcast %cst_11 : f32 to vector<32x128xf32>
    %15 = arith.maximumf %13, %14 : vector<32x128xf32>
    %16 = arith.truncf %15 : vector<32x128xf32> to vector<32x128xbf16>
    %c0_12 = arith.constant 0 : index
    %c0_13 = arith.constant 0 : index
    %17 = vector.load %arg6[%c0_12, %c0_13] : memref<128x128xbf16, #tpu.memory_space<vmem>>, vector<128x128xbf16>
    %cst_14 = arith.constant dense<0.000000e+00> : vector<32x128xf32>
    %18 = tpu.matmul %16, %17, %cst_14 {dimension_numbers = #tpu.dot_dimension_numbers<[1], [0], [0], [1], [0, 0, 1, 1], [], []>} : vector<32x128xbf16>, vector<128x128xbf16>, vector<32x128xf32> -> vector<32x128xf32>
    %c0_15 = arith.constant 0 : index
    %c0_16 = arith.constant 0 : index
    %19 = vector.load %arg7[%c0_15, %c0_16] : memref<1x128xf32, #tpu.memory_space<vmem>>, vector<1x128xf32>
    %20 = vector.broadcast %19 : vector<1x128xf32> to vector<32x128xf32>
    %21 = arith.addf %18, %20 : vector<32x128xf32>
    %cst_17 = arith.constant 0.000000e+00 : f32
    %22 = vector.broadcast %cst_17 : f32 to vector<32x128xf32>
    %23 = arith.maximumf %21, %22 : vector<32x128xf32>
    %24 = arith.truncf %23 : vector<32x128xf32> to vector<32x128xbf16>
    %c0_18 = arith.constant 0 : index
    %c0_19 = arith.constant 0 : index
    %25 = vector.load %arg8[%c0_18, %c0_19] : memref<128x128xbf16, #tpu.memory_space<vmem>>, vector<128x128xbf16>
    %cst_20 = arith.constant dense<0.000000e+00> : vector<32x128xf32>
    %26 = tpu.matmul %24, %25, %cst_20 {dimension_numbers = #tpu.dot_dimension_numbers<[1], [0], [0], [1], [0, 0, 1, 1], [], []>} : vector<32x128xbf16>, vector<128x128xbf16>, vector<32x128xf32> -> vector<32x128xf32>
    %c0_21 = arith.constant 0 : index
    %c0_22 = arith.constant 0 : index
    %27 = vector.load %arg9[%c0_21, %c0_22] : memref<1x128xf32, #tpu.memory_space<vmem>>, vector<1x128xf32>
    %28 = vector.broadcast %27 : vector<1x128xf32> to vector<32x128xf32>
    %29 = arith.addf %26, %28 : vector<32x128xf32>
    %cst_23 = arith.constant 0.000000e+00 : f32
    %30 = vector.broadcast %cst_23 : f32 to vector<32x128xf32>
    %31 = arith.maximumf %29, %30 : vector<32x128xf32>
    %32 = arith.truncf %31 : vector<32x128xf32> to vector<32x128xbf16>
    %c0_24 = arith.constant 0 : index
    %c0_25 = arith.constant 0 : index
    %33 = vector.load %arg10[%c0_24, %c0_25] : memref<128x128xbf16, #tpu.memory_space<vmem>>, vector<128x128xbf16>
    %cst_26 = arith.constant dense<0.000000e+00> : vector<32x128xf32>
    %34 = tpu.matmul %32, %33, %cst_26 {dimension_numbers = #tpu.dot_dimension_numbers<[1], [0], [0], [1], [0, 0, 1, 1], [], []>} : vector<32x128xbf16>, vector<128x128xbf16>, vector<32x128xf32> -> vector<32x128xf32>
    %c0_27 = arith.constant 0 : index
    %c0_28 = arith.constant 0 : index
    %35 = vector.load %arg11[%c0_27, %c0_28] : memref<1x128xf32, #tpu.memory_space<vmem>>, vector<1x128xf32>
    %36 = vector.broadcast %35 : vector<1x128xf32> to vector<32x128xf32>
    %37 = arith.addf %34, %36 : vector<32x128xf32>
    %cst_29 = arith.constant 0.000000e+00 : f32
    %38 = vector.broadcast %cst_29 : f32 to vector<32x128xf32>
    %39 = arith.maximumf %37, %38 : vector<32x128xf32>
    %40 = arith.truncf %39 : vector<32x128xf32> to vector<32x128xbf16>
    %c0_30 = arith.constant 0 : index
    %c0_31 = arith.constant 0 : index
    %41 = vector.load %arg12[%c0_30, %c0_31] : memref<128x128xbf16, #tpu.memory_space<vmem>>, vector<128x128xbf16>
    %cst_32 = arith.constant dense<0.000000e+00> : vector<32x128xf32>
    %42 = tpu.matmul %40, %41, %cst_32 {dimension_numbers = #tpu.dot_dimension_numbers<[1], [0], [0], [1], [0, 0, 1, 1], [], []>} : vector<32x128xbf16>, vector<128x128xbf16>, vector<32x128xf32> -> vector<32x128xf32>
    %c0_33 = arith.constant 0 : index
    %c0_34 = arith.constant 0 : index
    %43 = vector.load %arg13[%c0_33, %c0_34] : memref<1x128xf32, #tpu.memory_space<vmem>>, vector<1x128xf32>
    %44 = vector.broadcast %43 : vector<1x128xf32> to vector<32x128xf32>
    %45 = arith.addf %42, %44 : vector<32x128xf32>
    %c0_35 = arith.constant 0 : index
    %c0_36 = arith.constant 0 : index
    %46 = vector.load %arg14[%c0_35, %c0_36] : memref<32x128xf32, #tpu.memory_space<vmem>>, vector<32x128xf32>
    tpu.vector_store %arg14[%c0_35, %c0_36], %45 {strides = array<i32>} : memref<32x128xf32, #tpu.memory_space<vmem>>, vector<32x128xf32>,
    return
  }
  func.func @transform_0(%arg0: i32) -> (i32, i32) {
    %c0_i32 = arith.constant 0 : i32
    %c0_i32_0 = arith.constant 0 : i32
    return %arg0, %c0_i32 : i32, i32
  }
  func.func @transform_1(%arg0: i32) -> (i32, i32) {
    %c0_i32 = arith.constant 0 : i32
    %c0_i32_0 = arith.constant 0 : i32
    %c0_i32_1 = arith.constant 0 : i32
    return %c0_i32, %c0_i32_0 : i32, i32
  }
  func.func @transform_2(%arg0: i32) -> (i32, i32) {
    %c0_i32 = arith.constant 0 : i32
    %c0_i32_0 = arith.constant 0 : i32
    %c0_i32_1 = arith.constant 0 : i32
    return %c0_i32, %c0_i32_0 : i32, i32
  }
  func.func @transform_3(%arg0: i32) -> (i32, i32) {
    %c0_i32 = arith.constant 0 : i32
    %c0_i32_0 = arith.constant 0 : i32
    %c0_i32_1 = arith.constant 0 : i32
    return %c0_i32, %c0_i32_0 : i32, i32
  }
  func.func @transform_4(%arg0: i32) -> (i32, i32) {
    %c0_i32 = arith.constant 0 : i32
    %c0_i32_0 = arith.constant 0 : i32
    %c0_i32_1 = arith.constant 0 : i32
    return %c0_i32, %c0_i32_0 : i32, i32
  }
  func.func @transform_5(%arg0: i32) -> (i32, i32) {
    %c0_i32 = arith.constant 0 : i32
    %c0_i32_0 = arith.constant 0 : i32
    %c0_i32_1 = arith.constant 0 : i32
    return %c0_i32, %c0_i32_0 : i32, i32
  }
  func.func @transform_6(%arg0: i32) -> (i32, i32) {
    %c0_i32 = arith.constant 0 : i32
    %c0_i32_0 = arith.constant 0 : i32
    %c0_i32_1 = arith.constant 0 : i32
    return %c0_i32, %c0_i32_0 : i32, i32
  }
  func.func @transform_7(%arg0: i32) -> (i32, i32) {
    %c0_i32 = arith.constant 0 : i32
    %c0_i32_0 = arith.constant 0 : i32
    %c0_i32_1 = arith.constant 0 : i32
    return %c0_i32, %c0_i32_0 : i32, i32
  }
  func.func @transform_8(%arg0: i32) -> (i32, i32) {
    %c0_i32 = arith.constant 0 : i32
    %c0_i32_0 = arith.constant 0 : i32
    %c0_i32_1 = arith.constant 0 : i32
    return %c0_i32, %c0_i32_0 : i32, i32
  }
  func.func @transform_9(%arg0: i32) -> (i32, i32) {
    %c0_i32 = arith.constant 0 : i32
    %c0_i32_0 = arith.constant 0 : i32
    %c0_i32_1 = arith.constant 0 : i32
    return %c0_i32, %c0_i32_0 : i32, i32
  }
  func.func @transform_10(%arg0: i32) -> (i32, i32) {
    %c0_i32 = arith.constant 0 : i32
    %c0_i32_0 = arith.constant 0 : i32
    %c0_i32_1 = arith.constant 0 : i32
    return %c0_i32, %c0_i32_0 : i32, i32
  }
  func.func @transform_11(%arg0: i32) -> (i32, i32) {
    %c0_i32 = arith.constant 0 : i32
    %c0_i32_0 = arith.constant 0 : i32
    %c0_i32_1 = arith.constant 0 : i32
    return %c0_i32, %c0_i32_0 : i32, i32
  }
  func.func @transform_12(%arg0: i32) -> (i32, i32) {
    %c0_i32 = arith.constant 0 : i32
    %c0_i32_0 = arith.constant 0 : i32
    %c0_i32_1 = arith.constant 0 : i32
    return %c0_i32, %c0_i32_0 : i32, i32
  }
  func.func @transform_13(%arg0: i32) -> (i32, i32) {
    %c0_i32 = arith.constant 0 : i32
    %c0_i32_0 = arith.constant 0 : i32
    return %arg0, %c0_i32 : i32, i32
  }
}

</mosaic_0001>

<bundles_post_ra>
// kernel: tpu_custom_call.1
= control target key start
LH: loop header
LB: loop body
LE: loop exit
PB: predicated region body
PF: predicated region fallthrough
CT: control target
= control target key end

     0   :  { %s3439_s0 = inlined_call_operand.hbm [shape: bf16[64,896], index: 0, kind: input, shape index: {}]   ;;  %s3440_s1 = inlined_call_operand.hbm [shape: bf16[896,128], index: 1, kind: input, shape index: {}]   ;;  %s3441_s2 = inlined_call_operand.vmem [shape: f32[1,128], index: 2, kind: input, shape index: {}]   ;;  %s3442_s3 = inlined_call_operand.hbm [shape: bf16[128,128], index: 3, kind: input, shape index: {}]   ;;  %s3443_s4 = inlined_call_operand.vmem [shape: f32[1,128], index: 4, kind: input, shape index: {}]   ;;  %s3444_s5 = inlined_call_operand.hbm [shape: bf16[128,128], index: 5, kind: input, shape index: {}]   ;;  %s3445_s6 = inlined_call_operand.vmem [shape: f32[1,128], index: 6, kind: input, shape index: {}]   ;;  %s3446_s7 = inlined_call_operand.hbm [shape: bf16[128,128], index: 7, kind: input, shape index: {}]   ;;  %s3447_s8 = inlined_call_operand.vmem [shape: f32[1,128], index: 8, kind: input, shape index: {}]   ;;  %s3448_s9 = inlined_call_operand.hbm [shape: bf16[128,128], index: 9, kind: input, shape index: {}]   ;;  %s3449_s10 = inlined_call_operand.vmem [shape: f32[1,128], index: 10, kind: input, shape index: {}]   ;;  %s3450_s11 = inlined_call_operand.hbm [shape: bf16[128,128], index: 11, kind: input, shape index: {}]   ;;  %s3451_s12 = inlined_call_operand.vmem [shape: f32[1,128], index: 12, kind: input, shape index: {}]   ;;  %s3452_s13 = inlined_call_operand.hbm [shape: f32[64,128], index: 13, kind: output, shape index: {}]  }
   0x1   :  { %3457 = sst [smem:[#allocation20_spill]] %s3440_s1 }
   0x2   :  { %3458 = sst [smem:[#allocation21_spill]] %s3442_s3 }
   0x3   :  { %3459 = sst [smem:[#allocation22_spill]] %s3445_s6 }
   0x4   :  { %3460 = sst [smem:[#allocation23_spill]] %s3447_s8 }
   0x5   :  { %3461 = sst [smem:[#allocation24_spill]] %s3449_s10 }
   0x6   :  { %3462 = sst [smem:[#allocation25_spill]] %s3451_s12 }
   0x7   :  { %3463 = sst [smem:[#allocation26_spill]] %s3452_s13 }
   0x8   :  { %18 = vsyncpa [#allocation3], 0 }
   0x9   :  { %20 = vsyncpa [#allocation3 + $0x1], 0 }
   0xa   :  { %21 = vsyncpa [#allocation6], 0 }
   0xb   :  { %22 = vsyncpa [#allocation9], 0 }
   0xc   :  { %23 = vsyncpa [#allocation12], 0 }
   0xd   :  { %24 = vsyncpa [#allocation4], 0 }
   0xe   :  { %26 = vsyncpa [#allocation4 + $0x1], 0  ;;  %s3067_s25 = smov 0   ;;  %s3069_s26 = smov 0  }
   0xf   :  { %s3071_s27 = smov 0   ;;  %s3073_s28 = smov 0  }
  0x10 LB: > { %s2983_s29 = smov [#allocation5]   ;;  %s3088_s14 = sadd.s32 4294967295, %s2981_s28   ;;  %s2981_s28 = sphi %s3073_s28, %s3492_s28   ;;  %s2977_s27 = sphi %s3071_s27, %s3491_s27   ;;  %s2973_s26 = sphi %s3069_s26, %s3490_s26   ;;  %s2969_s25 = sphi %s3067_s25, %s3489_s25  }
  0x11   : > { %s353_s30 = sshll.u32 %s2983_s29, 4  ;;  %p2068_p0 = scmp.ge.s32.totalorder %s2981_s28, 1  ;;  %s3093_s30 = int_to_ptr.vmem [resolvable:$true] %s353_s30 }
  0x12   : > { %p3454_p1 = scmp.eq.s32.totalorder %s3088_s14, 0  ;;  %p341_p2 = scmp.lt.s32.totalorder %s2981_s28, 3 }
  0x13   : > { %s2984_s16 = smov [#allocation8]   ;;  %s2985_s19 = smov [#allocation11]  }
  0x14   : > { %p3095_p3 = pnand %p2068_p0, %p341_p2  ;;  %s385_s17 = sshll.u32 %s2984_s16, 4  ;;  %s3108_s17 = int_to_ptr.vmem [resolvable:$true] %s385_s17 }
  0x15   : > { %s417_s20 = sshll.u32 %s2985_s19, 4  ;;  %s3466_s1 = sld [smem:[#allocation20_spill]]  ;;  %s3110_s20 = int_to_ptr.vmem [resolvable:$true] %s417_s20 }
  0x16   : > { %s3464_s15 = scalar_select %p3095_p3, 1, 0 }
  0x17   : > { %p2504_p5 = pneg %p3095_p3 }
  0x19   : > { %p3104_p6 = pnand %p2504_p5, %p3454_p1 }
  0x1b   : > { %s2705_s23 = scalar_lea.hbm %s3466_s1, 7168  ;;  %p3120_p8 = pneg %p3104_p6 }
  0x1c   : > { %p2706_p7 = scmp.ne.s32.totalorder %s3466_s1, %s2705_s23  ;;  %p2712_p11 = scmp.lt.u32.totalorder %s2705_s23, %s3466_s1 }
  0x1e   : > { %p2708_p9 = pnand %p3120_p8, %p2706_p7 }
  0x20   : > { %p2709_p10 = pneg %p2708_p9 }
  0x22   : > { %p2714_p12 = pnand %p2712_p11, %p2709_p10 }
  0x24   : > { %2717 = shalt.err (!%p2714_p12)
}
  0x25   : > { %s2718_s21 = scalar_lea.vmem %s3093_s30, 7168  ;;  %p2726_p5 = scmp.lt.s32.totalorder %s3093_s30, %s3093_s30 }
  0x26   : > { %p2719_p13 = scmp.ne.s32.totalorder %s3093_s30, %s2718_s21  ;;  %p2727_p4 = scmp.lt.s32.totalorder %s2718_s21, %s2718_s21 }
  0x28   : > { %p2721_p0 = pnand %p2719_p13, %p3120_p8  ;;  %p2728_p7 = por %p2727_p4, %p2726_p5 }
  0x2a   : > { %p2722_p2 = pneg %p2721_p0 }
  0x2c   : > { %p2729_p9 = pnand %p2728_p7, %p2722_p2 }
  0x2e   : > { %2732 = shalt.err (!%p2729_p9)
}
  0x2f   : > { %s2986_s22 = smov 64   ;;  %s2987_s13 = smov 4  }
  0x30   : > { %2507 = dma.hbm_to_vmem [thread:$0]  (!%p3104_p6), %s3466_s1, 7168, %s3093_s30, [#allocation6], %s2986_s22, %s2986_s22, %s2987_s13  }
  0x31   : > { %s2733_s21 = scalar_lea.hbm %s3444_s5, 1024 }
  0x32   : > { %p2734_p4 = scmp.ne.s32.totalorder %s3444_s5, %s2733_s21  ;;  %p2740_p12 = scmp.lt.u32.totalorder %s2733_s21, %s3444_s5 }
  0x34   : > { %p2736_p10 = pnand %p2734_p4, %p3120_p8 }
  0x36   : > { %p2737_p11 = pneg %p2736_p10 }
  0x38   : > { %p2742_p13 = pnand %p2740_p12, %p2737_p11 }
  0x3a   : > { %2745 = shalt.err (!%p2742_p13)
}
  0x3b   : > { %s2746_s30 = scalar_lea.vmem %s3108_s17, 1024  ;;  %p2754_p7 = scmp.lt.s32.totalorder %s3108_s17, %s3108_s17 }
  0x3c   : > { %p2747_p0 = scmp.ne.s32.totalorder %s3108_s17, %s2746_s30  ;;  %p2755_p9 = scmp.lt.s32.totalorder %s2746_s30, %s2746_s30 }
  0x3e   : > { %p2749_p2 = pnand %p2747_p0, %p3120_p8  ;;  %p2756_p4 = por %p2755_p9, %p2754_p7 }
  0x40   : > { %p2750_p5 = pneg %p2749_p2 }
  0x42   : > { %p2757_p10 = pnand %p2756_p4, %p2750_p5 }
  0x44   : > { %2760 = shalt.err (!%p2757_p10)
}
  0x45   : > { %2513 = dma.hbm_to_vmem [thread:$0]  (!%p3104_p6), %s3444_s5, 1024, %s3108_s17, [#allocation9], %s2986_s22, %s2986_s22, %s2987_s13  }
  0x46   : > { %s2761_s23 = scalar_lea.hbm %s3448_s9, 1024 }
  0x47   : > { %p2762_p11 = scmp.ne.s32.totalorder %s3448_s9, %s2761_s23  ;;  %p2768_p0 = scmp.lt.u32.totalorder %s2761_s23, %s3448_s9 }
  0x49   : > { %p2764_p12 = pnand %p2762_p11, %p3120_p8 }
  0x4b   : > { %p2765_p13 = pneg %p2764_p12 }
  0x4d   : > { %p2770_p2 = pnand %p2768_p0, %p2765_p13 }
  0x4f   : > { %2773 = shalt.err (!%p2770_p2)
}
  0x50   : > { %s2774_s17 = scalar_lea.vmem %s3110_s20, 1024  ;;  %p2782_p4 = scmp.lt.s32.totalorder %s3110_s20, %s3110_s20 }
  0x51   : > { %p2775_p5 = scmp.ne.s32.totalorder %s3110_s20, %s2774_s17  ;;  %p2783_p10 = scmp.lt.s32.totalorder %s2774_s17, %s2774_s17 }
  0x53   : > { %p2777_p7 = pnand %p2775_p5, %p3120_p8  ;;  %p2784_p11 = por %p2783_p10, %p2782_p4 }
  0x55   : > { %p2778_p9 = pneg %p2777_p7 }
  0x57   : > { %p2785_p12 = pnand %p2784_p11, %p2778_p9 }
  0x59   : > { %2788 = shalt.err (!%p2785_p12)
}
  0x5a   : > { %2519 = dma.hbm_to_vmem [thread:$0]  (!%p3104_p6), %s3448_s9, 1024, %s3110_s20, [#allocation12], %s2986_s22, %s2986_s22, %s2987_s13  }
  0x5b   : > { %s2988_s8 = smov [#allocation7]   ;;  %s2989_s12 = smov [#allocation10]  }
  0x5c   : > { %s369_s10 = sshll.u32 %s2988_s8, 4  ;;  %s401_s23 = sshll.u32 %s2989_s12, 4  ;;  %s370_s10 = int_to_ptr.vmem [resolvable:$true] %s369_s10  ;;  %s402_s23 = int_to_ptr.vmem [resolvable:$true] %s401_s23 }
  0x5d   : > { %s3468_s3 = sld [smem:[#allocation21_spill]] }
  0x63   : > { %s2789_s19 = scalar_lea.hbm %s3468_s3, 1024 }
  0x64   : > { %p2790_p13 = scmp.ne.s32.totalorder %s3468_s3, %s2789_s19  ;;  %p2796_p5 = scmp.lt.u32.totalorder %s2789_s19, %s3468_s3 }
  0x66   : > { %p2792_p0 = pnand %p2790_p13, %p3120_p8 }
  0x68   : > { %p2793_p2 = pneg %p2792_p0 }
  0x6a   : > { %p2798_p7 = pnand %p2796_p5, %p2793_p2 }
  0x6c   : > { %2801 = shalt.err (!%p2798_p7)
}
  0x6d   : > { %s2802_s20 = scalar_lea.vmem %s370_s10, 1024  ;;  %p2810_p11 = scmp.lt.s32.totalorder %s370_s10, %s370_s10 }
  0x6e   : > { %p2803_p9 = scmp.ne.s32.totalorder %s370_s10, %s2802_s20  ;;  %p2811_p12 = scmp.lt.s32.totalorder %s2802_s20, %s2802_s20 }
  0x70   : > { %p2805_p4 = pnand %p2803_p9, %p3120_p8  ;;  %p2812_p1 = por %p2811_p12, %p2810_p11 }
  0x72   : > { %p2806_p10 = pneg %p2805_p4 }
  0x74   : > { %p2813_p3 = pnand %p2812_p1, %p2806_p10 }
  0x76   : > { %2816 = shalt.err (!%p2813_p3)
}
  0x77   : > { %2510 = dma.hbm_to_vmem [thread:$0]  (!%p3104_p6), %s3468_s3, 1024, %s370_s10, [#allocation6], %s2986_s22, %s2986_s22, %s2987_s13  }
  0x78   : > { %s2817_s24 = scalar_lea.hbm %s3446_s7, 1024 }
  0x79   : > { %p2818_p1 = scmp.ne.s32.totalorder %s3446_s7, %s2817_s24  ;;  %p2824_p0 = scmp.lt.u32.totalorder %s2817_s24, %s3446_s7 }
  0x7b   : > { %p2820_p3 = pnand %p2818_p1, %p3120_p8 }
  0x7d   : > { %p2821_p13 = pneg %p2820_p3 }
  0x7f   : > { %p2826_p2 = pnand %p2824_p0, %p2821_p13 }
  0x81   : > { %2829 = shalt.err (!%p2826_p2)
}
  0x82   : > { %s2830_s30 = scalar_lea.vmem %s402_s23, 1024  ;;  %p2838_p4 = scmp.lt.s32.totalorder %s402_s23, %s402_s23 }
  0x83   : > { %p2831_p5 = scmp.ne.s32.totalorder %s402_s23, %s2830_s30  ;;  %p2839_p10 = scmp.lt.s32.totalorder %s2830_s30, %s2830_s30 }
  0x85   : > { %p2833_p7 = pnand %p2831_p5, %p3120_p8  ;;  %p2840_p11 = por %p2839_p10, %p2838_p4 }
  0x87   : > { %p2834_p9 = pneg %p2833_p7 }
  0x89   : > { %p2841_p12 = pnand %p2840_p11, %p2834_p9 }
  0x8b   : > { %2844 = shalt.err (!%p2841_p12)
}
  0x8c   : > { %2516 = dma.hbm_to_vmem [thread:$0]  (!%p3104_p6), %s3446_s7, 1024, %s402_s23, [#allocation9], %s2986_s22, %s2986_s22, %s2987_s13  }
  0x8d   : > { %s2990_s1 = smov [#allocation13]   ;;  %s2845_s24 = scalar_lea.hbm %s3450_s11, 1024 }
  0x8e   : > { %s433_s6 = sshll.u32 %s2990_s1, 4  ;;  %p2846_p1 = scmp.ne.s32.totalorder %s3450_s11, %s2845_s24  ;;  %s434_s6 = int_to_ptr.vmem [resolvable:$true] %s433_s6 }
  0x8f   : > { %p2852_p0 = scmp.lt.u32.totalorder %s2845_s24, %s3450_s11 }
  0x90   : > { %p2848_p3 = pnand %p2846_p1, %p3120_p8 }
  0x92   : > { %p2849_p13 = pneg %p2848_p3 }
  0x94   : > { %p2854_p2 = pnand %p2852_p0, %p2849_p13 }
  0x96   : > { %2857 = shalt.err (!%p2854_p2)
}
  0x97   : > { %s2858_s23 = scalar_lea.vmem %s434_s6, 1024  ;;  %p2866_p4 = scmp.lt.s32.totalorder %s434_s6, %s434_s6 }
  0x98   : > { %p2859_p5 = scmp.ne.s32.totalorder %s434_s6, %s2858_s23  ;;  %p2867_p10 = scmp.lt.s32.totalorder %s2858_s23, %s2858_s23 }
  0x9a   : > { %p2861_p7 = pnand %p2859_p5, %p3120_p8  ;;  %p2868_p11 = por %p2867_p10, %p2866_p4 }
  0x9c   : > { %p2862_p9 = pneg %p2861_p7 }
  0x9e   : > { %p2869_p12 = pnand %p2868_p11, %p2862_p9 }
  0xa0   : > { %2872 = shalt.err (!%p2869_p12)
}
  0xa1   : > { %2522 = dma.hbm_to_vmem [thread:$0]  (!%p3104_p6), %s3450_s11, 1024, %s434_s6, [#allocation12], %s2986_s22, %s2986_s22, %s2987_s13  }
  0xa2   : > { %s2067_s18 = sadd.s32 4294967294, %s2981_s28   ;;  %s3261_s16 = sadd.s32 1, %s2981_s28  }
  0xa3   : > { %s36_s20 = ssub.s32 %s2981_s28, %s3261_s16  ;;  %s39_s1 = sadd.s32 1, %s2977_s27 }
  0xa4   : > { %p37_p8 = scmp.eq.s32.totalorder %s36_s20, 0  ;;  %p46_p1 = scmp.ne.s32.totalorder %s2977_s27, %s2973_s26 }
  0xa5   : > { %p47_p3 = scmp.eq.s32.totalorder %s2981_s28, 0  ;;  %p52_p13 = scmp.ne.s32.totalorder %s2973_s26, %s2969_s25 }
  0xa6   : > { %s3272_s8 = scalar_select %p37_p8, %s2977_s27, %s39_s1  }
  0xa7   : > { %p48_p0 = por %p47_p3, %p46_p1  ;;  %p3469_p2 = scmp.eq.s32.totalorder %s3088_s14, 0 }
  0xa8   : > { %p328_p6 = scmp.eq.s32.totalorder %s3088_s14, 1  ;;  %p334_p7 = scmp.eq.s32.totalorder %s2067_s18, 1 }
  0xa9   : > { %p3276_p5 = por %p3469_p2, %p52_p13  ;;  %p2537_p9 = scmp.lt.s32.totalorder %s2981_s28, 2 }
  0xaa   : > { %s450_s22 = sand.u32 1, %s2977_s27   ;;  %p3283_p4 = por %p328_p6, %p46_p1 }
  0xab   : > { %p3287_p10 = por %p334_p7, %p52_p13  ;;  %s2473_s24 = smul.u32 112, %s450_s22 }
  0xac   : > { %s3471_s13 = scalar_select %p3283_p4, 1, 0 }
  0xad   : > { %s3472_s6 = scalar_select %p3287_p10, 1, 0 }
  0xae   : > { %s2474_s29 = smul.u32 1792, %s2981_s28  ;;  %p3292_p11 = pnand %p2537_p9, %p48_p0 }
  0xaf   : > { %s454_s30 = scalar_lea.vmem [#allocation2], %s2473_s24  ;;  %s3303_s18 = scalar_lea.sflag [#allocation3], %s450_s22 }
  0xb0   : > { %s3299_s23 = scalar_lea.hbm %s3439_s0, %s2474_s29  ;;  %s462_s10 = sshll.u32 %s454_s30, 4  ;;  %s3301_s10 = int_to_ptr.vmem [resolvable:$true] %s462_s10 }
  0xb1   : > { %s2873_s20 = scalar_lea.hbm %s3299_s23, 1792  ;;  %p2875_p8 = pneg %p3292_p11 }
  0xb2   : > { %p2874_p12 = scmp.ne.s32.totalorder %s3299_s23, %s2873_s20  ;;  %s2878_s21 = scalar_lea.hbm %s3439_s0, 3584 }
  0xb3   : > { %p2879_p13 = scmp.lt.u32.totalorder %s3299_s23, %s3439_s0  ;;  %p2880_p0 = scmp.lt.u32.totalorder %s2878_s21, %s2873_s20 }
  0xb4   : > { %p2876_p1 = pnand %p2875_p8, %p2874_p12  ;;  %p2882_p6 = scmp.lt.u32.totalorder %s2873_s20, %s3299_s23 }
  0xb5   : > { %p2881_p2 = por %p2880_p0, %p2879_p13 }
  0xb6   : > { %p2877_p3 = pneg %p2876_p1 }
  0xb7   : > { %p2883_p7 = por %p2882_p6, %p2881_p2 }
  0xb9   : > { %p2884_p9 = pnand %p2883_p7, %p2877_p3 }
  0xbb   : > { %2887 = shalt.err (!%p2884_p9)
}
  0xbc   : > { %s2888_s22 = scalar_lea.vmem %s3301_s10, 1792  ;;  %s2991_s24 = smov [#allocation2]  }
  0xbd   : > { %p2889_p12 = scmp.ne.s32.totalorder %s3301_s10, %s2888_s22  ;;  %s2893_s30 = sshll.u32 %s2991_s24, 4  ;;  %s2894_s30 = int_to_ptr.vmem [resolvable:$false] %s2893_s30 }
  0xbe   : > { %s2895_s3 = scalar_lea.vmem %s2894_s30, 3584  ;;  %p2896_p4 = scmp.lt.s32.totalorder %s3301_s10, %s2894_s30 }
  0xbf   : > { %p2891_p1 = pnand %p2889_p12, %p2875_p8  ;;  %p2897_p13 = scmp.lt.s32.totalorder %s2895_s3, %s2888_s22 }
  0xc1   : > { %p2892_p10 = pneg %p2891_p1  ;;  %p2898_p0 = por %p2897_p13, %p2896_p4 }
  0xc3   : > { %p2899_p2 = pnand %p2898_p0, %p2892_p10 }
  0xc5   : > { %2902 = shalt.err (!%p2899_p2)
}
  0xc6   : > { %s2992_s20 = smov 448   ;;  %s2993_s1 = smov 28  }
  0xc7   : > { %2526 = dma.hbm_to_vmem [thread:$0]  (!%p3292_p11), %s3299_s23, 1792, %s3301_s10, %s3303_s18, %s2992_s20, %s2992_s20, %s2993_s1  }
  0xc8   : > { %p3474_p8 = scmp.ne.s32.totalorder %s3464_s15, 0 }
  0xc9   : > { %s3334_s29 = sand.u32 (!%p3474_p8), 1, %s2973_s26  }
  0xca   : > { %474 = sbr.rel (%p3474_p8) target bundleno = 1638 (0x666), region = 72  ;;  %s477_s17 = scalar_lea.sflag (!%p3474_p8), [#allocation3], %s3334_s29 }
  0xcb   : > { %s2475_s21 = smul.u32 (!%p3474_p8), 112, %s3334_s29 }
  0xcd   : > { %s3338_s22 = scalar_lea.vmem (!%p3474_p8), [#allocation2], %s2475_s21 }
  0xd1   : > { %2948 = dma.done.wait (%p3276_p5), %s477_s17, 1792  }
  0xd2   : > { %2950 = vsyncadd (%p3276_p5), %s477_s17, 4294965504  ;;  %p3475_p4 = scmp.eq.s32.totalorder %s3088_s14, 0 }
  0xd4   : > { %2952 = dma.done.wait (%p3475_p4), [#allocation6], 8192   ;;  %p3476_p10 = pmov %p3475_p4 }
  0xd5   : > { %p3477_p11 = pmov %p3475_p4 }
  0xd6   : > { %2954 = vsyncadd (%p3476_p10), [#allocation6], 4294959104 }
  0xd7   : > { %2956 = dma.done.wait (%p3477_p11), [#allocation9], 2048   ;;  %p3478_p3 = pmov %p3475_p4 }
  0xd9   : > { %2958 = vsyncadd (%p3478_p3), [#allocation9], 4294965248  ;;  %p3479_p6 = pmov %p3478_p3 }
  0xda   : > { %p3480_p7 = pmov %p3478_p3 }
  0xdb   : > { %2960 = dma.done.wait (%p3479_p6), [#allocation12], 2048  }
  0xdc   : > { %2962 = vsyncadd (%p3480_p7), [#allocation12], 4294965248  ;;  %v2589_v0 = vld [vmem:[#allocation5 + $0x40] sm:$0xff]   ;;  %v2593_v4 = vld [vmem:[#allocation5 + $0x48] sm:$0xff]   ;;  %s3481_s24 = sld [smem:[#allocation22_spill]]  ;;  %s3482_s20 = sld [smem:[#allocation23_spill]] }
  0xdd   : > { %v2590_v1 = vld [vmem:[#allocation5] sm:$0xff]   ;;  %2209 = vmatprep.subr.bf16.mxu0 %v2589_v0  ;;  %v2594_v5 = vld [vmem:[#allocation5 + $0x8] sm:$0xff]   ;;  %v2597_v8 = vld [vmem:[#allocation5 + $0x50] sm:$0xff]   ;;  %s3483_s17 = sld [smem:[#allocation24_spill]]  ;;  %s3484_s19 = sld [smem:[#allocation25_spill]] }
  0xde   : > { %v2591_v2 = vld [vmem:[#allocation5 + $0xc0] sm:$0xff]   ;;  %2210 = vmatpush3.bf16.msra.mxu0 %v2590_v1  ;;  %v2595_v6 = vld [vmem:[#allocation5 + $0xc8] sm:$0xff]   ;;  %v2598_v9 = vld [vmem:[#allocation5 + $0x10] sm:$0xff]   ;;  %s2208_s18 = sshll.u32 %s3088_s14, 9  ;;  %s3485_s3 = sld [smem:[#allocation26_spill]] }
  0xdf   : > { %v2592_v3 = vld [vmem:[#allocation5 + $0x80] sm:$0xff]   ;;  %2237 = vmatprep.subr.bf16.mxu1 %v2591_v2  ;;  %2211 = vmatprep.subr.bf16.mxu0 %v2593_v4  ;;  %v2596_v7 = vld [vmem:[#allocation5 + $0x88] sm:$0xff]   ;;  %v2599_v10 = vld [vmem:[#allocation5 + $0xd0] sm:$0xff]   ;;  %s1924_s14 = scalar_lea.sflag [#allocation4], %s3334_s29  ;;  %p3486_p9 = scmp.ne.s32.totalorder %s3471_s13, 0 }
  0xe0   : > { %2238 = vmatpush3.bf16.msra.mxu1 %v2592_v3  ;;  %v2600_v11 = vld [vmem:[#allocation5 + $0x90] sm:$0xff]   ;;  %v2601_v12 = vld [vmem:[#allocation5 + $0x58] sm:$0xff]   ;;  %v2605_v16 = vld [vmem:[#allocation5 + $0x60] sm:$0xff]   ;;  %s2994_s21 = smov [#allocation14]  }
  0xe1   : > { %2239 = vmatprep.subr.bf16.mxu1 %v2595_v6  ;;  %v2602_v13 = vld [vmem:[#allocation5 + $0x18] sm:$0xff]   ;;  %v2606_v17 = vld [vmem:[#allocation5 + $0x20] sm:$0xff]   ;;  %v2609_v20 = vld [vmem:[#allocation5 + $0x68] sm:$0xff]  }
  0xe2   : > { %2212 = vmatpush3.bf16.msra.mxu0 %v2594_v5  ;;  %v2603_v14 = vld [vmem:[#allocation5 + $0xd8] sm:$0xff]   ;;  %v2607_v18 = vld [vmem:[#allocation5 + $0xe0] sm:$0xff]   ;;  %v2610_v21 = vld [vmem:[#allocation5 + $0x28] sm:$0xff]  }
  0xe3   : > { %2213 = vmatprep.subr.bf16.mxu0 %v2597_v8  ;;  %v2604_v15 = vld [vmem:[#allocation5 + $0x98] sm:$0xff]   ;;  %v2608_v19 = vld [vmem:[#allocation5 + $0xa0] sm:$0xff]   ;;  %v2611_v22 = vld [vmem:[#allocation5 + $0xe8] sm:$0xff]  }
  0xe4   : > { %2240 = vmatpush3.bf16.msra.mxu1 %v2596_v7  ;;  %v2612_v23 = vld [vmem:[#allocation5 + $0xa8] sm:$0xff]   ;;  %v2613_v24 = vld [vmem:[#allocation5 + $0x70] sm:$0xff]   ;;  %v2617_v28 = vld [vmem:[#allocation5 + $0x78] sm:$0xff]  }
  0xe5   : > { %2241 = vmatprep.subr.bf16.mxu1 %v2599_v10  ;;  %v2614_v25 = vld [vmem:[#allocation5 + $0x30] sm:$0xff]   ;;  %v2618_v29 = vld [vmem:[#allocation5 + $0x38] sm:$0xff]   ;;  %v2624_v34 = vld [vmem:[#allocation5 + $0x140] sm:$0xff]  }
  0xe6   : > { %2214 = vmatpush3.bf16.msra.mxu0 %v2598_v9  ;;  %v2615_v26 = vld [vmem:[#allocation5 + $0xf0] sm:$0xff]   ;;  %v2619_v30 = vld [vmem:[#allocation5 + $0xf8] sm:$0xff]   ;;  %v2628_v37 = vld [vmem:[#allocation5 + $0x100] sm:$0xff]  }
  0xe7   : > { %2215 = vmatprep.subr.bf16.mxu0 %v2601_v12  ;;  %v2616_v27 = vld [vmem:[#allocation5 + $0xb0] sm:$0xff]   ;;  %v2623_v33 = vld [vmem:[#allocation5 + $0xb8] sm:$0xff]   ;;  %v2629_v38 = vld [vmem:[#allocation5 + $0x148] sm:$0xff]  }
  0xe8   : > { %2242 = vmatpush3.bf16.msra.mxu1 %v2600_v11  ;;  %v2620_v31 = vld [vmem:[%s3338_s22] ss:$28 sps:$4 sm:$0xff]   ;;  %v2625_v35 = vld [vmem:[%s3338_s22 + $0x8] ss:$28 sps:$4 sm:$0xff]   ;;  %v2645_v53 = vld [vmem:[%s3338_s22 + $0x38] ss:$28 sps:$4 sm:$0xff]  }
  0xe9   : > { %2243 = vmatprep.subr.bf16.mxu1 %v2603_v14  ;;  %v2622_v32 = vld [vmem:[%s3338_s22 + $0x4] ss:$28 sps:$4 sm:$0xff]   ;;  %v2627_v36 = vld [vmem:[%s3338_s22 + $0xc] ss:$28 sps:$4 sm:$0xff]   ;;  %v2641_v50 = vld [vmem:[%s3338_s22 + $0x3c] ss:$28 sps:$4 sm:$0xff]  }
  0xea   : > { %2216 = vmatpush3.bf16.msra.mxu0 %v2602_v13  ;;  %1125 = vmatprep.mubr.bf16.mxu0 %v2622_v32  ;;  %v2630_v39 = vld [vmem:[#allocation5 + $0x180] sm:$0xff]   ;;  %v2631_v40 = vld [vmem:[#allocation5 + $0x108] sm:$0xff]   ;;  %v2632_v41 = vld [vmem:[#allocation5 + $0x150] sm:$0xff]  }
  0xeb   : > { %2217 = vmatprep.subr.bf16.mxu0 %v2605_v16  ;;  %1174 = vmatprep.mubr.bf16.mxu1 %v2627_v36  ;;  %v2633_v42 = vld [vmem:[#allocation5 + $0x188] sm:$0xff]   ;;  %v2634_v43 = vld [vmem:[#allocation5 + $0x110] sm:$0xff]   ;;  %v2635_v44 = vld [vmem:[#allocation5 + $0x158] sm:$0xff]  }
  0xec   : > { %2244 = vmatpush3.bf16.msra.mxu1 %v2604_v15  ;;  %v2636_v45 = vld [vmem:[#allocation5 + $0x190] sm:$0xff]   ;;  %v2637_v46 = vld [vmem:[#allocation5 + $0x118] sm:$0xff]   ;;  %v2638_v47 = vld [vmem:[#allocation5 + $0x160] sm:$0xff]  }
  0xed   : > { %2245 = vmatprep.subr.bf16.mxu1 %v2607_v18  ;;  %v2639_v48 = vld [vmem:[#allocation5 + $0x198] sm:$0xff]   ;;  %v2640_v49 = vld [vmem:[#allocation5 + $0x120] sm:$0xff]   ;;  %v2643_v51 = vld [vmem:[#allocation5 + $0x168] sm:$0xff]  }
  0xee   : > { %2218 = vmatpush3.bf16.msra.mxu0 %v2606_v17  ;;  %v2644_v52 = vld [vmem:[#allocation5 + $0x1a0] sm:$0xff]   ;;  %v2646_v54 = vld [vmem:[#allocation5 + $0x128] sm:$0xff]   ;;  %v2650_v57 = vld [vmem:[#allocation5 + $0x170] sm:$0xff]  }
  0xef   : > { %2219 = vmatprep.subr.bf16.mxu0 %v2609_v20  ;;  %v2647_v55 = vld [vmem:[%s3338_s22 + $0x44] ss:$28 sps:$4 sm:$0xff]   ;;  %v2651_v58 = vld [vmem:[#allocation5 + $0x1a8] sm:$0xff]   ;;  %v2653_v60 = vld [vmem:[#allocation5 + $0x178] sm:$0xff]  }
  0xf0   : > { %2246 = vmatpush3.bf16.msra.mxu1 %v2608_v19  ;;  %v2649_v56 = vld [vmem:[%s3338_s22 + $0x40] ss:$28 sps:$4 sm:$0xff]   ;;  %v2658_v63 = vld [vmem:[%s3338_s22 + $0x14] ss:$28 sps:$4 sm:$0xff]   ;;  %v2662_v3 = vld [vmem:[%s3338_s22 + $0x4c] ss:$28 sps:$4 sm:$0xff]  }
  0xf1   : > { %2247 = vmatprep.subr.bf16.mxu1 %v2611_v22  ;;  %v2652_v59 = vld [vmem:[#allocation5 + $0x130] sm:$0xff]   ;;  %v2655_v62 = vld [vmem:[#allocation5 + $0x138] sm:$0xff]   ;;  %v2665_v6 = vld [vmem:[#allocation7] sm:$0xff]  }
  0xf2   : > { %2220 = vmatpush3.bf16.msra.mxu0 %v2610_v21  ;;  %v2654_v61 = vld [vmem:[#allocation5 + $0x1b0] sm:$0xff]   ;;  %v2659_v0 = vld [vmem:[#allocation5 + $0x1b8] sm:$0xff]   ;;  %v2666_v7 = vld [vmem:[#allocation7 + $0x8] sm:$0xff]  }
  0xf3   : > { %2221 = vmatprep.subr.bf16.mxu0 %v2613_v24  ;;  %v2660_v1 = vld [vmem:[%s3338_s22 + $0x18] ss:$28 sps:$4 sm:$0xff]   ;;  %v2656_v2 = vld [vmem:[%s3338_s22 + $0x10] ss:$28 sps:$4 sm:$0xff]   ;;  %v2664_v5 = vld [vmem:[%s3338_s22 + $0x48] ss:$28 sps:$4 sm:$0xff]  }
  0xf4   : > { %2248 = vmatpush3.bf16.msra.mxu1 %v2612_v23  ;;  %v2661_v4 = vld [vmem:[%s3338_s22 + $0x50] ss:$28 sps:$4 sm:$0xff]   ;;  %s2086_s22 = sshll.u32 %s3334_s29, 5 }
  0xf5   : > { %2249 = vmatprep.subr.bf16.mxu1 %v2615_v26  ;;  %v2667_v8 = vld [vmem:[#allocation7 + $0x10] sm:$0xff]   ;;  %v2668_v9 = vld [vmem:[#allocation7 + $0x18] sm:$0xff]   ;;  %v2669_v10 = vld [vmem:[#allocation7 + $0x20] sm:$0xff]   ;;  %s546_s23 = scalar_lea.vmem [#allocation14], %s2086_s22 }
  0xf6   : > { %2222 = vmatpush3.bf16.msra.mxu0 %v2614_v25  ;;  %v2670_v11 = vld [vmem:[#allocation7 + $0x28] sm:$0xff]   ;;  %v2671_v12 = vld [vmem:[#allocation7 + $0x30] sm:$0xff]   ;;  %v2672_v13 = vld [vmem:[#allocation7 + $0x38] sm:$0xff]   ;;  %s1937_s10 = sshll.u32 %s546_s23, 4  ;;  %s3390_s10 = int_to_ptr.vmem [resolvable:$true] %s1937_s10 }
  0xf7   : > { %2223 = vmatprep.subr.bf16.mxu0 %v2617_v28  ;;  %v2673_v14 = vld [vmem:[#allocation8] sm:$0xff]   ;;  %v2674_v15 = vld [vmem:[#allocation8 + $0x8] sm:$0xff]   ;;  %v2675_v16 = vld [vmem:[#allocation8 + $0x10] sm:$0xff]   ;;  %s2903_s1 = scalar_lea.vmem %s3390_s10, 512 }
  0xf8   : > { %2250 = vmatpush3.bf16.msra.mxu1 %v2616_v27  ;;  %v2676_v17 = vld [vmem:[#allocation8 + $0x18] sm:$0xff]   ;;  %v2677_v18 = vld [vmem:[#allocation8 + $0x20] sm:$0xff]   ;;  %v2678_v19 = vld [vmem:[#allocation8 + $0x28] sm:$0xff]   ;;  %p2904_p5 = scmp.ne.s32.totalorder %s3390_s10, %s2903_s1 }
  0xf9   : > { %2251 = vmatprep.subr.bf16.mxu1 %v2619_v30  ;;  %v2087_v21 = vld [vmem:[%s3441_s2] ss:$0 sm:$0xff] }
  0xfa   : > { %2224 = vmatpush3.bf16.msra.mxu0 %v2618_v29  ;;  %p2905_p12 = pnand %p2904_p5, %p3486_p9 }
  0xfb   : > { %2265 = vmatprep.subr.bf16.mxu0 %v2624_v34 }
  0xfc   : > { %2252 = vmatpush3.bf16.msra.mxu1 %v2623_v33  ;;  %p2906_p1 = pneg %p2905_p12 }
  0xfd   : > { %1126 = vmatmul.mubr.bf16.vlgmr.msra.gmra.mrb[0].mxu0 %v2620_v31  ;;  %2353 = vmatprep.subr.bf16.mxu1 %v2630_v39 }
  0xfe   : > { %2266 = vmatpush3.bf16.msra.mxu0 %v2628_v37  ;;  %1133 = vmatprep.mubr.bf16.mxu0 %v2641_v50 }
  0xff   : > { %1175 = vmatmul.mubr.bf16.vlgmr.msra.gmra.mrb[0].mxu1 %v2625_v35  ;;  %2267 = vmatprep.subr.bf16.mxu0 %v2629_v38 }
 0x100   : > { %2354 = vmatpush3.bf16.msra.mxu1 %v2630_v39  ;;  %1182 = vmatprep.mubr.bf16.mxu1 %v2647_v55 }
 0x101   : > { %2355 = vmatprep.subr.bf16.mxu1 %v2633_v42 }
 0x102   : > { %2268 = vmatpush3.bf16.msra.mxu0 %v2631_v40 }
 0x103   : > { %2269 = vmatprep.subr.bf16.mxu0 %v2632_v41 }
 0x104   : > { %2356 = vmatpush3.bf16.msra.mxu1 %v2633_v42 }
 0x105   : > { %2357 = vmatprep.subr.bf16.mxu1 %v2636_v45  ;;  %1134 = vmatmul.mubr.bf16.gmra.mrb[4].mxu0 %v2645_v53 }
 0x106   : > { %2270 = vmatpush3.bf16.msra.mxu0 %v2634_v43  ;;  %1223 = vmatprep.mubr.bf16.mxu0 %v2658_v63 }
 0x107   : > { %2271 = vmatprep.subr.bf16.mxu0 %v2635_v44  ;;  %1183 = vmatmul.mubr.bf16.gmra.mrb[4].mxu1 %v2649_v56 }
 0x108   : > { %2358 = vmatpush3.bf16.msra.mxu1 %v2636_v45  ;;  %2369 = vmatprep.mubr.bf16.mxu1 %v2660_v1 }
 0x109   : > { %2359 = vmatprep.subr.bf16.mxu1 %v2639_v48 }
 0x10a   : > { %2272 = vmatpush3.bf16.msra.mxu0 %v2637_v46 }
 0x10b   : > { %2273 = vmatprep.subr.bf16.mxu0 %v2638_v47 }
 0x10c   : > { %2360 = vmatpush3.bf16.msra.mxu1 %v2639_v48 }
 0x10d   : > { %2361 = vmatprep.subr.bf16.mxu1 %v2644_v52 }
 0x10e   : > { %2274 = vmatpush3.bf16.msra.mxu0 %v2640_v49 }
 0x10f   : > { %2275 = vmatprep.subr.bf16.mxu0 %v2643_v51 }
 0x110   : > { %2362 = vmatpush3.bf16.msra.mxu1 %v2644_v52 }
 0x111   : > { %2363 = vmatprep.subr.bf16.mxu1 %v2651_v58 }
 0x112   : > { %2276 = vmatpush3.bf16.msra.mxu0 %v2646_v54 }
 0x113   : > { %2277 = vmatprep.subr.bf16.mxu0 %v2650_v57 }
 0x114   : > { %2364 = vmatpush3.bf16.msra.mxu1 %v2651_v58 }
 0x115   : > { %2365 = vmatprep.subr.bf16.mxu1 %v2654_v61 }
 0x116   : > { %2278 = vmatpush3.bf16.msra.mxu0 %v2652_v59 }
 0x117   : > { %2279 = vmatprep.subr.bf16.mxu0 %v2653_v60 }
 0x118   : > { %2366 = vmatpush3.bf16.msra.mxu1 %v2654_v61 }
 0x119   : > { %2367 = vmatprep.subr.bf16.mxu1 %v2659_v0 }
 0x11a   : > { %2280 = vmatpush3.bf16.msra.mxu0 %v2655_v62 }
 0x11b   : > { %2373 = vmatprep.subr.bf16.mxu0 %v2665_v6 }
 0x11c   : > { %2368 = vmatpush3.bf16.msra.mxu1 %v2659_v0 }
 0x11d   : > { %1224 = vmatmul.mubr.bf16.vlgmr.msra.gmra.mrb[8].mxu0 %v2656_v2  ;;  %2393 = vmatprep.subr.bf16.mxu1 %v2673_v14 }
 0x11e   : > { %1231 = vmatprep.mubr.bf16.mxu0 %v2662_v3  ;;  %2374 = vmatpush3.bf16.msra.mxu0 %v2665_v6 }
 0x11f   : > { %2370 = vmatmul.mubr.bf16.vlgmr.msra.gmra.mrb[8].mxu1 %v2661_v4  ;;  %2375 = vmatprep.subr.bf16.mxu0 %v2666_v7 }
 0x120   : > { %2394 = vmatpush3.bf16.msra.mxu1 %v2673_v14 }
 0x121   : > { %2395 = vmatprep.subr.bf16.mxu1 %v2674_v15 }
 0x122   : > { %2376 = vmatpush3.bf16.msra.mxu0 %v2666_v7 }
 0x123   : > { %2377 = vmatprep.subr.bf16.mxu0 %v2667_v8 }
 0x124   : > { %2396 = vmatpush3.bf16.msra.mxu1 %v2674_v15 }
 0x125   : > { %1232 = vmatmul.mubr.bf16.gmra.mrb[12].mxu0 %v2664_v5  ;;  %2397 = vmatprep.subr.bf16.mxu1 %v2675_v16 }
 0x126   : > { %2378 = vmatpush3.bf16.msra.mxu0 %v2667_v8 }
 0x127   : > { %2379 = vmatprep.subr.bf16.mxu0 %v2668_v9 }
 0x128   : > { %2398 = vmatpush3.bf16.msra.mxu1 %v2675_v16 }
 0x129   : > { %2399 = vmatprep.subr.bf16.mxu1 %v2676_v17 }
 0x12a   : > { %2380 = vmatpush3.bf16.msra.mxu0 %v2668_v9 }
 0x12b   : > { %2381 = vmatprep.subr.bf16.mxu0 %v2669_v10 }
 0x12c   : > { %2400 = vmatpush3.bf16.msra.mxu1 %v2676_v17 }
 0x12d   : > { %2401 = vmatprep.subr.bf16.mxu1 %v2677_v18 }
 0x12e   : > { %2382 = vmatpush3.bf16.msra.mxu0 %v2669_v10 }
 0x12f   : > { %2383 = vmatprep.subr.bf16.mxu0 %v2670_v11 }
 0x130   : > { %2402 = vmatpush3.bf16.msra.mxu1 %v2677_v18 }
 0x131   : > { %2403 = vmatprep.subr.bf16.mxu1 %v2678_v19 }
 0x132   : > { %2384 = vmatpush3.bf16.msra.mxu0 %v2670_v11 }
 0x133   : > { %2385 = vmatprep.subr.bf16.mxu0 %v2671_v12 }
 0x134   : > { %2404 = vmatpush3.bf16.msra.mxu1 %v2678_v19  ;;  %v2679_v19 = vld [vmem:[#allocation8 + $0x30] sm:$0xff]  }
 0x135   : > { %2405 = vmatprep.subr.bf16.mxu1 %v2679_v19 }
 0x136   : > { %2386 = vmatpush3.bf16.msra.mxu0 %v2671_v12 }
 0x137   : > { %2387 = vmatprep.subr.bf16.mxu0 %v2672_v13 }
 0x138   : > { %2406 = vmatpush3.bf16.msra.mxu1 %v2679_v19 }
 0x13a   : > { %2388 = vmatpush3.bf16.msra.mxu0 %v2672_v13 }
 0x1d0   : > { %v2225_v20 = vpop.f32.mrb[0].mxu0 }
 0x1d1   : > { %v2226_v22 = vpop.f32.mrb[1].mxu0 }
 0x1d2   : > { %v2227_v23 = vadd.f32 %v2226_v22, %v2225_v20  ;;  %v2228_v24 = vpop.f32.mrb[2].mxu0  ;;  %v2253_v25 = vpop.f32.mrb[0].mxu1  ;;  %v2680_v20 = vld [vmem:[#allocation8 + $0x38] sm:$0xff]   ;;  %v2682_v22 = vld [vmem:[#allocation10 + $0x8] sm:$0xff]  }
 0x1d3   : > { %v2229_v26 = vpop.f32.mrb[3].mxu0  ;;  %v2254_v29 = vpop.f32.mrb[1].mxu1  ;;  %2407 = vmatprep.subr.bf16.mxu1 %v2680_v20 }
 0x1d4   : > { %v1128_v27 = vadd.f32 %v2227_v23, %v2087_v21  ;;  %v2230_v28 = vadd.f32 %v2229_v26, %v2228_v24  ;;  %v2255_v30 = vadd.f32 %v2254_v29, %v2253_v25  ;;  %v2256_v31 = vpop.f32.mrb[2].mxu1  ;;  %2408 = vmatpush3.bf16.msra.mxu1 %v2680_v20  ;;  %v2683_v23 = vld [vmem:[#allocation10 + $0x10] sm:$0xff]   ;;  %v2684_v24 = vld [vmem:[#allocation10 + $0x18] sm:$0xff]   ;;  %v2685_v25 = vld [vmem:[#allocation10 + $0x20] sm:$0xff]  }
 0x1d5   : > { %v2257_v33 = vpop.f32.mrb[3].mxu1  ;;  %v2686_v26 = vld [vmem:[#allocation10 + $0x28] sm:$0xff]  }
 0x1d6   : > { %v1131_v32 = vadd.f32 %v2230_v28, %v2087_v21  ;;  %v1177_v34 = vadd.f32 %v2255_v30, %v1128_v27  ;;  %v2258_v35 = vadd.f32 %v2257_v33, %v2256_v31  ;;  %v2158_v27 = vld [vmem:[%s3443_s4] ss:$0 sm:$0xff] }
 0x1d8   : > { %v1180_v36 = vadd.f32 %v2258_v35, %v1131_v32  ;;  %v2231_v37 = vpop.f32.mrb[4].mxu0 }
 0x1d9   : > { %v2232_v38 = vpop.f32.mrb[5].mxu0 }
 0x1da   : > { %v2233_v39 = vadd.f32 %v2232_v38, %v2231_v37  ;;  %v2234_v40 = vpop.f32.mrb[6].mxu0  ;;  %v2259_v41 = vpop.f32.mrb[4].mxu1 }
 0x1db   : > { %v2235_v42 = vpop.f32.mrb[7].mxu0  ;;  %v2260_v45 = vpop.f32.mrb[5].mxu1 }
 0x1dc   : > { %v1136_v43 = vadd.f32 %v2233_v39, %v2087_v21  ;;  %v2236_v44 = vadd.f32 %v2235_v42, %v2234_v40  ;;  %v2261_v46 = vadd.f32 %v2260_v45, %v2259_v41  ;;  %v2262_v47 = vpop.f32.mrb[6].mxu1  ;;  %v2687_v42 = vld [vmem:[#allocation10 + $0x30] sm:$0xff]   ;;  %v2690_v45 = vld [vmem:[#allocation11 + $0x8] sm:$0xff]  }
 0x1dd   : > { %v2263_v49 = vpop.f32.mrb[7].mxu1 }
 0x1de   : > { %v1139_v48 = vadd.f32 %v2236_v44, %v2087_v21  ;;  %v1185_v50 = vadd.f32 %v2261_v46, %v1136_v43  ;;  %v2264_v51 = vadd.f32 %v2263_v49, %v2262_v47  ;;  %v2681_v21 = vld [vmem:[#allocation10] sm:$0xff]   ;;  %v2688_v43 = vld [vmem:[#allocation10 + $0x38] sm:$0xff]   ;;  %v2691_v46 = vld [vmem:[#allocation11 + $0x10] sm:$0xff]  }
 0x1df   : > { %2413 = vmatprep.subr.bf16.mxu0 %v2681_v21  ;;  %v2689_v44 = vld [vmem:[#allocation11] sm:$0xff]   ;;  %v2692_v47 = vld [vmem:[#allocation11 + $0x18] sm:$0xff]   ;;  %v2694_v49 = vld [vmem:[#allocation11 + $0x28] sm:$0xff]  }
 0x1e0   : > { %v1188_v52 = vadd.f32 %v2264_v51, %v1139_v48  ;;  %2433 = vmatprep.subr.bf16.mxu1 %v2689_v44  ;;  %v2693_v48 = vld [vmem:[#allocation11 + $0x20] sm:$0xff]  }
 0x1f0   : > { %v2281_v53 = vpop.f32.mrb[8].mxu0 }
 0x1f1   : > { %v2282_v54 = vpop.f32.mrb[9].mxu0 }
 0x1f2   : > { %v2283_v55 = vadd.f32 %v2282_v54, %v2281_v53  ;;  %v2284_v56 = vpop.f32.mrb[10].mxu0  ;;  %v2371_v58 = vpop.f32.mrb[8].mxu1 }
 0x1f3   : > { %v2285_v57 = vpop.f32.mrb[11].mxu0  ;;  %v1274_v61 = vpop.f32.mrb[9].mxu1 }
 0x1f4   : > { %v2286_v59 = vadd.f32 %v2285_v57, %v2284_v56  ;;  %v1226_v60 = vadd.f32 %v2283_v55, %v1177_v34  ;;  %v2372_v62 = vpop.f32.mrb[10].mxu1 }
 0x1f5   : > { %v1277_v1 = vpop.f32.mrb[11].mxu1 }
 0x1f6   : > { %v1275_v63 = vadd.f32 %v1274_v61, %v1226_v60  ;;  %v1229_v0 = vadd.f32 %v2286_v59, %v1180_v36 }
 0x1f8   : > { %v1278_v2 = vadd.f32 %v1277_v1, %v1229_v0  ;;  %v2287_v3 = vpop.f32.mrb[12].mxu0  ;;  %v1289_v5 = vmax.f32 %v1275_v63, 0.0  ;;  %v2695_v1 = vld [vmem:[#allocation11 + $0x30] sm:$0xff]  }
 0x1f9   : > { %v2288_v4 = vpop.f32.mrb[13].mxu0 }
 0x1fa   : > { %v1290_v6 = vmax.f32 %v1278_v2, 0.0  ;;  %v2289_v7 = vadd.f32 %v2288_v4, %v2287_v3  ;;  %v2290_v8 = vpop.f32.mrb[14].mxu0  ;;  %v2696_v2 = vld [vmem:[#allocation11 + $0x38] sm:$0xff]   ;;  %v2697_v3 = vld [vmem:[#allocation13] sm:$0xff]   ;;  %v2698_v4 = vld [vmem:[#allocation13 + $0x8] sm:$0xff]  }
 0x1fb   : > { %v2291_v9 = vpop.f32.mrb[15].mxu0 }
 0x1fc   : > { %v1293_v10 = vpack.c.bf16 %v1290_v6, %v1289_v5  ;;  %v1234_v11 = vadd.f32 %v2289_v7, %v1185_v50  ;;  %v2292_v12 = vadd.f32 %v2291_v9, %v2290_v8  ;;  %v2167_v50 = vld [vmem:[%s3481_s24] ss:$0 sm:$0xff]  ;;  %v2699_v5 = vld [vmem:[#allocation13 + $0x10] sm:$0xff]   ;;  %v2700_v6 = vld [vmem:[#allocation13 + $0x18] sm:$0xff]  }
 0x1fd   : > { %v2701_v7 = vld [vmem:[#allocation13 + $0x20] sm:$0xff]   ;;  %v2702_v8 = vld [vmem:[#allocation13 + $0x28] sm:$0xff]  }
 0x1fe   : > { %v1283_v13 = vadd.f32 %v2371_v58, %v1234_v11  ;;  %v1237_v14 = vadd.f32 %v2292_v12, %v1188_v52  ;;  %2389 = vmatprep.mubr.bf16.mxu0 %v1293_v10  ;;  %v2176_v9 = vld [vmem:[%s3482_s20] ss:$0 sm:$0xff]  ;;  %s3395_s20 = scalar_lea.hbm %s3485_s3, %s2208_s18 }
 0x200   : > { %v1286_v15 = vadd.f32 %v2372_v62, %v1237_v14  ;;  %v1291_v16 = vmax.f32 %v1283_v13, 0.0 }
 0x202   : > { %v1292_v17 = vmax.f32 %v1286_v15, 0.0 }
 0x204   : > { %v1294_v18 = vpack.c.bf16 %v1292_v17, %v1291_v16 }
 0x206   : > { %2390 = vmatmul.mubr.bf16.vlgmr.msra.gmra.mrb[16].mxu0 %v1294_v18 }
 0x207   : > { %2414 = vmatpush3.bf16.msra.mxu0 %v2681_v21 }
 0x208   : > { %2415 = vmatprep.subr.bf16.mxu0 %v2682_v22 }
 0x20b   : > { %2416 = vmatpush3.bf16.msra.mxu0 %v2682_v22 }
 0x20c   : > { %2417 = vmatprep.subr.bf16.mxu0 %v2683_v23 }
 0x20f   : > { %2418 = vmatpush3.bf16.msra.mxu0 %v2683_v23 }
 0x210   : > { %2419 = vmatprep.subr.bf16.mxu0 %v2684_v24 }
 0x213   : > { %2420 = vmatpush3.bf16.msra.mxu0 %v2684_v24  ;;  %v2703_v24 = vld [vmem:[#allocation13 + $0x30] sm:$0xff]  }
 0x214   : > { %2421 = vmatprep.subr.bf16.mxu0 %v2685_v25 }
 0x217   : > { %2422 = vmatpush3.bf16.msra.mxu0 %v2685_v25  ;;  %v2704_v25 = vld [vmem:[#allocation13 + $0x38] sm:$0xff]  }
 0x218   : > { %2423 = vmatprep.subr.bf16.mxu0 %v2686_v26 }
 0x21b   : > { %2424 = vmatpush3.bf16.msra.mxu0 %v2686_v26  ;;  %v2185_v26 = vld [vmem:[%s3483_s17] ss:$0 sm:$0xff]  ;;  %s2907_s17 = sshll.u32 %s2994_s21, 4  ;;  %s2908_s17 = int_to_ptr.vmem [resolvable:$false] %s2907_s17 }
 0x21c   : > { %2425 = vmatprep.subr.bf16.mxu0 %v2687_v42  ;;  %s2909_s22 = scalar_lea.vmem %s2908_s17, 1024  ;;  %p2910_p13 = scmp.lt.s32.totalorder %s3390_s10, %s2908_s17 }
 0x21d   : > { %p2911_p0 = scmp.lt.s32.totalorder %s2909_s22, %s2903_s1 }
 0x21f   : > { %2426 = vmatpush3.bf16.msra.mxu0 %v2687_v42  ;;  %p2912_p2 = por %p2911_p0, %p2910_p13 }
 0x220   : > { %2427 = vmatprep.subr.bf16.mxu0 %v2688_v43 }
 0x221   : > { %p2913_p8 = pnand %p2912_p2, %p2906_p1 }
 0x223   : > { %2428 = vmatpush3.bf16.msra.mxu0 %v2688_v43 }
 0x224   : > { %2453 = vmatprep.subr.bf16.mxu0 %v2697_v3 }
 0x2d9   : > { %v2391_v28 = vpop.f32.mrb[16].mxu0 }
 0x2da   : > { %v1409_v29 = vadd.f32 %v2391_v28, %v2158_v27  ;;  %v1400_v30 = vpop.f32.mrb[17].mxu0 }
 0x2db   : > { %v1401_v31 = vadd.f32 %v2158_v27, %v1400_v30  ;;  %v2392_v32 = vpop.f32.mrb[18].mxu0 }
 0x2dc   : > { %v1412_v33 = vadd.f32 %v2392_v32, %v2158_v27  ;;  %v1403_v34 = vpop.f32.mrb[19].mxu0  ;;  %v1417_v36 = vmax.f32 %v1409_v29, 0.0 }
 0x2dd   : > { %v1404_v35 = vadd.f32 %v2158_v27, %v1403_v34  ;;  %v1415_v38 = vmax.f32 %v1401_v31, 0.0 }
 0x2de   : > { %v1418_v37 = vmax.f32 %v1412_v33, 0.0 }
 0x2df   : > { %v1416_v39 = vmax.f32 %v1404_v35, 0.0 }
 0x2e0   : > { %v1420_v40 = vpack.c.bf16 %v1418_v37, %v1417_v36 }
 0x2e1   : > { %v1419_v41 = vpack.c.bf16 %v1416_v39, %v1415_v38 }
 0x2e3   : > { %2409 = vmatprep.mubr.bf16.mxu1 %v1419_v41  ;;  %v2194_v41 = vld [vmem:[%s3484_s19] ss:$0 sm:$0xff] }
 0x2e4   : > { %2410 = vmatmul.mubr.bf16.vlgmr.msra.gmra.mrb[12].mxu1 %v1420_v40 }
 0x2e5   : > { %2434 = vmatpush3.bf16.msra.mxu1 %v2689_v44 }
 0x2e6   : > { %2435 = vmatprep.subr.bf16.mxu1 %v2690_v45 }
 0x2e9   : > { %2436 = vmatpush3.bf16.msra.mxu1 %v2690_v45 }
 0x2ea   : > { %2437 = vmatprep.subr.bf16.mxu1 %v2691_v46 }
 0x2ed   : > { %2438 = vmatpush3.bf16.msra.mxu1 %v2691_v46 }
 0x2ee   : > { %2439 = vmatprep.subr.bf16.mxu1 %v2692_v47 }
 0x2f1   : > { %2440 = vmatpush3.bf16.msra.mxu1 %v2692_v47 }
 0x2f2   : > { %2441 = vmatprep.subr.bf16.mxu1 %v2693_v48 }
 0x2f5   : > { %2442 = vmatpush3.bf16.msra.mxu1 %v2693_v48 }
 0x2f6   : > { %2443 = vmatprep.subr.bf16.mxu1 %v2694_v49 }
 0x2f9   : > { %2444 = vmatpush3.bf16.msra.mxu1 %v2694_v49 }
 0x2fa   : > { %2445 = vmatprep.subr.bf16.mxu1 %v2695_v1 }
 0x2fd   : > { %2446 = vmatpush3.bf16.msra.mxu1 %v2695_v1 }
 0x2fe   : > { %2447 = vmatprep.subr.bf16.mxu1 %v2696_v2 }
 0x301   : > { %2448 = vmatpush3.bf16.msra.mxu1 %v2696_v2 }
 0x3b7   : > { %v2411_v51 = vpop.f32.mrb[12].mxu1 }
 0x3b8   : > { %v1535_v52 = vadd.f32 %v2411_v51, %v2167_v50  ;;  %v1526_v53 = vpop.f32.mrb[13].mxu1 }
 0x3b9   : > { %v1527_v54 = vadd.f32 %v2167_v50, %v1526_v53  ;;  %v2412_v55 = vpop.f32.mrb[14].mxu1 }
 0x3ba   : > { %v1538_v56 = vadd.f32 %v2412_v55, %v2167_v50  ;;  %v1529_v57 = vpop.f32.mrb[15].mxu1  ;;  %v1543_v59 = vmax.f32 %v1535_v52, 0.0 }
 0x3bb   : > { %v1530_v58 = vadd.f32 %v2167_v50, %v1529_v57  ;;  %v1541_v61 = vmax.f32 %v1527_v54, 0.0 }
 0x3bc   : > { %v1544_v60 = vmax.f32 %v1538_v56, 0.0 }
 0x3bd   : > { %v1542_v62 = vmax.f32 %v1530_v58, 0.0 }
 0x3be   : > { %v1546_v63 = vpack.c.bf16 %v1544_v60, %v1543_v59 }
 0x3bf   : > { %v1545_v0 = vpack.c.bf16 %v1542_v62, %v1541_v61 }
 0x3c1   : > { %2429 = vmatprep.mubr.bf16.mxu0 %v1545_v0 }
 0x3c2   : > { %2430 = vmatmul.mubr.bf16.vlgmr.msra.gmra.mrb[20].mxu0 %v1546_v63 }
 0x3c3   : > { %2454 = vmatpush3.bf16.msra.mxu0 %v2697_v3 }
 0x3c4   : > { %2455 = vmatprep.subr.bf16.mxu0 %v2698_v4 }
 0x3c7   : > { %2456 = vmatpush3.bf16.msra.mxu0 %v2698_v4 }
 0x3c8   : > { %2457 = vmatprep.subr.bf16.mxu0 %v2699_v5 }
 0x3cb   : > { %2458 = vmatpush3.bf16.msra.mxu0 %v2699_v5 }
 0x3cc   : > { %2459 = vmatprep.subr.bf16.mxu0 %v2700_v6 }
 0x3cf   : > { %2460 = vmatpush3.bf16.msra.mxu0 %v2700_v6 }
 0x3d0   : > { %2461 = vmatprep.subr.bf16.mxu0 %v2701_v7 }
 0x3d3   : > { %2462 = vmatpush3.bf16.msra.mxu0 %v2701_v7 }
 0x3d4   : > { %2463 = vmatprep.subr.bf16.mxu0 %v2702_v8 }
 0x3d7   : > { %2464 = vmatpush3.bf16.msra.mxu0 %v2702_v8 }
 0x3d8   : > { %2465 = vmatprep.subr.bf16.mxu0 %v2703_v24 }
 0x3db   : > { %2466 = vmatpush3.bf16.msra.mxu0 %v2703_v24 }
 0x3dc   : > { %2467 = vmatprep.subr.bf16.mxu0 %v2704_v25 }
 0x3df   : > { %2468 = vmatpush3.bf16.msra.mxu0 %v2704_v25 }
 0x495   : > { %v2431_v10 = vpop.f32.mrb[20].mxu0 }
 0x496   : > { %v1661_v11 = vadd.f32 %v2431_v10, %v2176_v9  ;;  %v1652_v12 = vpop.f32.mrb[21].mxu0 }
 0x497   : > { %v1653_v13 = vadd.f32 %v2176_v9, %v1652_v12  ;;  %v2432_v14 = vpop.f32.mrb[22].mxu0 }
 0x498   : > { %v1664_v15 = vadd.f32 %v2432_v14, %v2176_v9  ;;  %v1655_v16 = vpop.f32.mrb[23].mxu0  ;;  %v1669_v18 = vmax.f32 %v1661_v11, 0.0 }
 0x499   : > { %v1656_v17 = vadd.f32 %v2176_v9, %v1655_v16  ;;  %v1667_v20 = vmax.f32 %v1653_v13, 0.0 }
 0x49a   : > { %v1670_v19 = vmax.f32 %v1664_v15, 0.0 }
 0x49b   : > { %v1668_v21 = vmax.f32 %v1656_v17, 0.0 }
 0x49c   : > { %v1672_v22 = vpack.c.bf16 %v1670_v19, %v1669_v18 }
 0x49d   : > { %v1671_v23 = vpack.c.bf16 %v1668_v21, %v1667_v20 }
 0x49f   : > { %2449 = vmatprep.mubr.bf16.mxu1 %v1671_v23 }
 0x4a0   : > { %2450 = vmatmul.mubr.bf16.vlgmr.msra.gmra.mrb[16].mxu1 %v1672_v22 }
 0x573   : > { %v2451_v27 = vpop.f32.mrb[16].mxu1 }
 0x574   : > { %v1787_v28 = vadd.f32 %v2451_v27, %v2185_v26  ;;  %v1778_v29 = vpop.f32.mrb[17].mxu1 }
 0x575   : > { %v1779_v30 = vadd.f32 %v2185_v26, %v1778_v29  ;;  %v2452_v31 = vpop.f32.mrb[18].mxu1 }
 0x576   : > { %v1790_v32 = vadd.f32 %v2452_v31, %v2185_v26  ;;  %v1781_v33 = vpop.f32.mrb[19].mxu1  ;;  %v1795_v35 = vmax.f32 %v1787_v28, 0.0 }
 0x577   : > { %v1782_v34 = vadd.f32 %v2185_v26, %v1781_v33  ;;  %v1793_v37 = vmax.f32 %v1779_v30, 0.0 }
 0x578   : > { %v1796_v36 = vmax.f32 %v1790_v32, 0.0 }
 0x579   : > { %v1794_v38 = vmax.f32 %v1782_v34, 0.0 }
 0x57a   : > { %v1798_v39 = vpack.c.bf16 %v1796_v36, %v1795_v35 }
 0x57b   : > { %v1797_v40 = vpack.c.bf16 %v1794_v38, %v1793_v37 }
 0x57d   : > { %2469 = vmatprep.mubr.bf16.mxu0 %v1797_v40 }
 0x57e   : > { %2470 = vmatmul.mubr.bf16.vlgmr.msra.gmra.mrb[24].mxu0 %v1798_v39 }
 0x651   : > { %v2471_v42 = vpop.f32.mrb[24].mxu0 }
 0x652   : > { %v1913_v43 = vadd.f32 %v2471_v42, %v2194_v41  ;;  %v1904_v44 = vpop.f32.mrb[25].mxu0 }
 0x653   : > { %v1905_v45 = vadd.f32 %v2194_v41, %v1904_v44  ;;  %v2472_v46 = vpop.f32.mrb[26].mxu0 }
 0x654   : > { %1921 = vst [vmem:[%s546_s23 + $0x10] sm:$0xff] %v1913_v43  ;;  %v1916_v47 = vadd.f32 %v2472_v46, %v2194_v41  ;;  %v1907_v48 = vpop.f32.mrb[27].mxu0 }
 0x655   : > { %1919 = vst [vmem:[%s546_s23] sm:$0xff] %v1905_v45  ;;  %v1908_v49 = vadd.f32 %v2194_v41, %v1907_v48 }
 0x656   : > { %1922 = vst [vmem:[%s546_s23 + $0x18] sm:$0xff] %v1916_v47 }
 0x657   : > { %1920 = vst [vmem:[%s546_s23 + $0x8] sm:$0xff] %v1908_v49 }
 0x658   : > { %2916 = shalt.err (!%p2913_p8)
}
 0x659   : > { %s2917_s15 = scalar_lea.hbm %s3395_s20, 512  ;;  %s2921_s23 = scalar_lea.hbm %s3485_s3, 1024 }
 0x65a   : > { %p2918_p4 = scmp.ne.s32.totalorder %s3395_s20, %s2917_s15  ;;  %p2922_p3 = scmp.lt.u32.totalorder %s3395_s20, %s3485_s3 }
 0x65b   : > { %p2923_p6 = scmp.lt.u32.totalorder %s2921_s23, %s2917_s15  ;;  %p2925_p5 = scmp.lt.u32.totalorder %s2917_s15, %s3395_s20 }
 0x65c   : > { %p2919_p10 = pnand %p2918_p4, %p3486_p9 }
 0x65d   : > { %p2924_p7 = por %p2923_p6, %p2922_p3 }
 0x65e   : > { %p2920_p11 = pneg %p2919_p10 }
 0x65f   : > { %p2926_p12 = por %p2925_p5, %p2924_p7 }
 0x661   : > { %p2927_p1 = pnand %p2926_p12, %p2920_p11 }
 0x663   : > { %2930 = shalt.err (!%p2927_p1)
}
 0x664   : > { %s2995_s30 = smov 128   ;;  %s2996_s1 = smov 8  }
 0x665   : > { %2502 = dma.vmem_to_hbm [thread:$0]  (%p3486_p9), %s3390_s10, 512, %s3395_s20, %s1924_s14, %s2995_s30, %s2995_s30, %s2996_s1  }
 0x666 PF: > { %s1952_s21 = sand.u32 1, %s2969_s25   ;;  %p3487_p13 = scmp.ne.s32.totalorder %s3472_s6, 0 }
 0x667   : > { %p3488_p0 = scmp.ge.s32.totalorder %s2981_s28, 2  ;;  %s1953_s17 = scalar_lea.sflag [#allocation4], %s1952_s21 }
 0x669   : > { %p2528_p2 = pnand %p3488_p0, %p3487_p13 }
 0x66b   : > { %2964 = dma.done.wait (!%p2528_p2), %s1953_s17, 512  }
 0x66c   : > { %2966 = vsyncadd (!%p2528_p2), %s1953_s17, 4294966784  ;;  %p29_p8 = scmp.ge.s32.totalorder %s3261_s16, 4   ;;  %s3489_s25 = smov %s2973_s26 }
 0x66d   : > { %s3490_s26 = smov %s2977_s27  ;;  %s3491_s27 = smov %s3272_s8 }
 0x66e   : > { %s3492_s28 = smov %s3261_s16  ;;  %31 = sbr.rel (!%p29_p8) target bundleno = 16 (0x10), region = 141 }
 0x675   :  { %1958 = vsyncpa [#allocation3], 1 }
 0x676   :  { %1960 = vsyncpa [#allocation3 + $0x1], 1 }
 0x677   :  { %1961 = vsyncpa [#allocation6], 1 }
 0x678   :  { %1962 = vsyncpa [#allocation9], 1 }
 0x679   :  { %1963 = vsyncpa [#allocation12], 1 }
 0x67a   :  { %1964 = vsyncpa [#allocation4], 1 }
 0x67b   :  { %1966 = vsyncpa [#allocation4 + $0x1], 1 }

</bundles_post_ra>
